<compile_context>
chip_gen: v5e
topology: v5e:2x2
jax: 0.10.0
libtpu: 0.0.40
codegen_flags: <defaults>
</compile_context>

<pallas_src>
import functools

import numpy as np
import jax
import jax.numpy as jnp
from jax.experimental import pallas as pl
from jax.experimental.pallas import tpu as pltpu


def _spatial_attention_kernel(b_ref, wm_ref, x_ref, o_ref, *, W):
    """One batch block.

    b_ref : (1,) SMEM           conv bias
    wm_ref: (24, HWp) VMEM      per-tap (weight * edge-mask) rows:
                                [0:9] avg-plane taps, [9:18] max-plane taps,
                                [18:24] zero padding (sublane-aligned array)
    x_ref : (Nb, C, HWp) VMEM   input block (lane-dense, HWp % 128 == 0)
    o_ref : (Nb, C, HWp) VMEM   output block
    """
    Nb, C, HWp = x_ref.shape

    # --- Channel pooling (reduction over dim=1 of NCHW). ---------------------
    # Bind x only for the pooling; the gating pass re-reads x_ref so the full
    # block is not kept live across the 9-tap loop (avoids spills at large Nb).
    x = x_ref[...]
    avg = jnp.sum(x.astype(jnp.float32), axis=1) * jnp.float32(1.0 / C)   # (Nb, HWp)
    mx = jnp.max(x, axis=1).astype(jnp.float32)                           # (Nb, HWp)

    # --- 3x3 / pad=1 conv on the flattened planes. ---------------------------
    # Neighbour (dh, dw) is the flat offset dh*W + dw, realised as pltpu.roll;
    # out-of-image taps (row/col wrap and the HW->HWp lane padding) are zeroed
    # by the host-precomputed (weight * validity) rows, so the kernel never
    # broadcasts per-tap scalars from SMEM.
    acc = None
    for kh in range(3):
        for kw in range(3):
            k = kh * 3 + kw
            wa = wm_ref[k:k + 1, :]                      # (1, HWp) avg-plane tap
            wx = wm_ref[9 + k:10 + k, :]                 # (1, HWp) max-plane tap
            offset = (kh - 1) * W + (kw - 1)
            if offset == 0:
                term = wa * avg + wx * mx
            else:
                shift = (-offset) % HWp
                term = (wa * pltpu.roll(avg, shift, 1)
                        + wx * pltpu.roll(mx, shift, 1))
            acc = term if acc is None else acc + term

    attention = jax.nn.sigmoid(acc + b_ref[0])           # (Nb, HWp) f32
    # Gate in the input dtype (halves vld/vst traffic for bf16 on v6e/v7x);
    # re-read x_ref here instead of reusing the pooled-pass bind.
    attn = attention.astype(o_ref.dtype)
    o_ref[...] = x_ref[...] * attn[:, None, :]


def _round_up(v, m):
    return (v + m - 1) // m * m


def _vmem_plan(wm_bytes):
    """Generation-aware scoped-VMEM limit and per-step batch-block budget."""
    phys = 64 * 1024 * 1024                      # conservative default (v7x per-TC VMEM)
    try:
        info = pltpu.get_tpu_info()
        phys = int(getattr(info, "vmem_capacity_bytes", phys)) or phys
    except Exception:
        pass
    # ~25% headroom for compiler-internal scratch: 48 MiB on v7x (64 MiB VMEM),
    # 96 MiB on the 128 MiB-VMEM parts (v5e / v6e).
    limit = max(24 * 1024 * 1024, min((phys * 3) // 4, 96 * 1024 * 1024))
    # in + out are each double-buffered (4x block); wmasks ~2x; keep slack.
    max_block = (limit - 2 * wm_bytes - (2 << 20)) // 4
    max_block = int(max(1 << 20, min(max_block, 16 << 20)))
    return int(limit), max_block


def _pick_batch_block(N, bytes_per_image, max_block_bytes):
    """Largest divisor of N whose block fits the budget, preferring >= 4 grid
    steps so each v7x TensorCore still gets DMA/compute pipeline overlap."""
    cap = max(1, max_block_bytes // max(1, bytes_per_image))
    divisors = [d for d in range(1, N + 1) if N % d == 0 and d <= cap]
    if not divisors:
        return 1
    for min_steps in (4, 2, 1):
        good = [d for d in divisors if N // d >= min_steps]
        if good:
            return max(good)
    return max(divisors)


def spatial_attention(x, conv_w, conv_b):
    """x: (N, C, H, W); conv_w: (1, 2, 3, 3) [OIHW]; conv_b: (1,)."""
    N, C, H, W = x.shape
    HW = H * W
    HWp = _round_up(HW, 128)        # keep the lane axis dense -> unmasked vst
    # TODO(synk): add C-tiling (pool-accumulate over a C grid axis marked
    # 'arbitrary', then a gating sweep) or H-tiling with a 1-row halo for
    # images whose single-image (C, HWp) slab exceeds the per-step block budget.

    # Host-side constants: per-tap validity masks in the flattened padded
    # layout with the conv weights folded in; rows 18..23 are zero padding so
    # the wmask array is a whole number of sublane tiles.
    rows = np.arange(HW) // W
    cols = np.arange(HW) % W
    mask_np = np.zeros((9, HWp), np.float32)
    for kh in range(3):
        for kw in range(3):
            dh, dw = kh - 1, kw - 1
            ok = ((rows + dh >= 0) & (rows + dh < H) &
                  (cols + dw >= 0) & (cols + dw < W))
            mask_np[kh * 3 + kw, :HW] = ok.astype(np.float32)
    masks = jnp.asarray(mask_np)                                     # (9, HWp)
    w2 = conv_w.reshape(2, 9).astype(jnp.float32)                    # in-ch 0 = avg, 1 = max
    wm = (w2[:, :, None] * masks[None, :, :]).reshape(18, HWp)
    wm = jnp.concatenate([wm, jnp.zeros((6, HWp), jnp.float32)], 0)  # (24, HWp)
    bias = conv_b.reshape(1).astype(jnp.float32)

    x3 = x.reshape(N, C, HW)                                         # lane-dense layout
    if HWp != HW:
        x3 = jnp.pad(x3, ((0, 0), (0, 0), (0, HWp - HW)))

    wm_bytes = 24 * HWp * 4
    vmem_limit, max_block_bytes = _vmem_plan(wm_bytes)
    Nb = _pick_batch_block(N, C * HWp * x.dtype.itemsize, max_block_bytes)
    grid = (N // Nb,)

    out3 = pl.pallas_call(
        functools.partial(_spatial_attention_kernel, W=W),
        out_shape=jax.ShapeDtypeStruct((N, C, HWp), x.dtype),
        grid_spec=pltpu.PrefetchScalarGridSpec(
            num_scalar_prefetch=0,
            grid=grid,
            in_specs=[
                pl.BlockSpec(memory_space=pltpu.MemorySpace.SMEM),   # conv bias (1,)
                pl.BlockSpec((24, HWp), lambda n: (0, 0)),           # folded weights*masks
                pl.BlockSpec((Nb, C, HWp), lambda n: (n, 0, 0)),     # x batch block
            ],
            out_specs=pl.BlockSpec((Nb, C, HWp), lambda n: (n, 0, 0)),
        ),
        compiler_params=pltpu.CompilerParams(
            dimension_semantics=("parallel",),
            vmem_limit_bytes=vmem_limit,
        ),
    )(bias, wm, x3)

    if HWp != HW:
        out3 = out3[:, :, :HW]
    return out3.reshape(N, C, H, W)


def _reference(x, conv_w, conv_b):
    """Pure-JAX reference reproducing the PyTorch forward."""
    avg_pool = jnp.mean(x, axis=1, keepdims=True)
    max_pool = jnp.max(x, axis=1, keepdims=True)
    pool = jnp.concatenate([avg_pool, max_pool], axis=1)
    attn = jax.lax.conv_general_dilated(
        pool, conv_w, window_strides=(1, 1), padding="SAME",
        dimension_numbers=("NCHW", "OIHW", "NCHW"))
    attn = jax.nn.sigmoid(attn + conv_b.reshape(1, 1, 1, 1))
    return x * attn


if __name__ == "__main__":
    key = jax.random.PRNGKey(0)
    kx, kw, kb = jax.random.split(key, 3)

    N, C, H, W = 2, 4, 16, 16
    x = jax.random.normal(kx, (N, C, H, W), dtype=jnp.float32)
    # Conv2d(2, 1, kernel_size=3) weight + bias shapes (OIHW).
    conv_w = jax.random.normal(kw, (1, 2, 3, 3), dtype=jnp.float32) * 0.1
    conv_b = jax.random.normal(kb, (1,), dtype=jnp.float32) * 0.1

    out = spatial_attention(x, conv_w, conv_b)
    out = jax.block_until_ready(out)

    ref = _reference(x, conv_w, conv_b)
    assert out.shape == (N, C, H, W)
    assert jnp.allclose(out, ref, atol=1e-5, rtol=1e-5), "mismatch vs reference"
    print("KERNEL_OK")
</pallas_src>

<mosaic_0001>
module attributes {stable_mosaic.version = 11 : i64} {
  func.func @_spatial_attention_kernel(%arg0: i32, %arg1: memref<1xf32, #tpu.memory_space<smem>>, %arg2: memref<24x256xf32, #tpu.memory_space<vmem>>, %arg3: memref<1x4x256xf32, #tpu.memory_space<vmem>>, %arg4: memref<1x4x256xf32, #tpu.memory_space<vmem>>) attributes {dimension_semantics = [#tpu.dimension_semantics<parallel>], iteration_bounds = array<i64: 2>, scalar_prefetch = 0 : i64, scratch_operands = 0 : i64, tpu.core_type = #tpu.core_type<tc>, window_params = [{transform_indices = @transform_0, window_bounds = array<i64: 1>}, {pipeline_mode = #tpu.pipeline_mode<synchronous>, transform_indices = @transform_1, window_bounds = array<i64: 24, 256>}, {transform_indices = @transform_2, window_bounds = array<i64: 1, 4, 256>}, {transform_indices = @transform_3, window_bounds = array<i64: 1, 4, 256>}]} {
    %c0 = arith.constant 0 : index
    %c0_0 = arith.constant 0 : index
    %c0_1 = arith.constant 0 : index
    %0 = vector.load %arg3[%c0, %c0_0, %c0_1] : memref<1x4x256xf32, #tpu.memory_space<vmem>>, vector<1x4x256xf32>
    %cst = arith.constant dense<0.000000e+00> : vector<1x256xf32>
    %1 = vector.multi_reduction <add>, %0, %cst [1] : vector<1x4x256xf32> to vector<1x256xf32>
    %cst_2 = arith.constant 2.500000e-01 : f32
    %2 = vector.broadcast %cst_2 : f32 to vector<1x256xf32>
    %3 = arith.mulf %1, %2 : vector<1x256xf32>
    %cst_3 = arith.constant dense<0xFF800000> : vector<1x256xf32>
    %4 = vector.multi_reduction <maximumf>, %0, %cst_3 [1] : vector<1x4x256xf32> to vector<1x256xf32>
    %c0_4 = arith.constant 0 : index
    %c0_5 = arith.constant 0 : index
    %5 = vector.load %arg2[%c0_4, %c0_5] : memref<24x256xf32, #tpu.memory_space<vmem>>, vector<1x256xf32>
    %c9 = arith.constant 9 : index
    %c0_6 = arith.constant 0 : index
    %6 = vector.load %arg2[%c9, %c0_6] : memref<24x256xf32, #tpu.memory_space<vmem>>, vector<1x256xf32>
    %c17_i32 = arith.constant 17 : i32
    %7 = tpu.dynamic_rotate %3 by %c17_i32 dim 1 : vector<1x256xf32>, i32 -> vector<1x256xf32>
    %8 = arith.mulf %5, %7 : vector<1x256xf32>
    %c17_i32_7 = arith.constant 17 : i32
    %9 = tpu.dynamic_rotate %4 by %c17_i32_7 dim 1 : vector<1x256xf32>, i32 -> vector<1x256xf32>
    %10 = arith.mulf %6, %9 : vector<1x256xf32>
    %11 = arith.addf %8, %10 : vector<1x256xf32>
    %c1 = arith.constant 1 : index
    %c0_8 = arith.constant 0 : index
    %12 = vector.load %arg2[%c1, %c0_8] : memref<24x256xf32, #tpu.memory_space<vmem>>, vector<1x256xf32>
    %c10 = arith.constant 10 : index
    %c0_9 = arith.constant 0 : index
    %13 = vector.load %arg2[%c10, %c0_9] : memref<24x256xf32, #tpu.memory_space<vmem>>, vector<1x256xf32>
    %c16_i32 = arith.constant 16 : i32
    %14 = tpu.dynamic_rotate %3 by %c16_i32 dim 1 : vector<1x256xf32>, i32 -> vector<1x256xf32>
    %15 = arith.mulf %12, %14 : vector<1x256xf32>
    %c16_i32_10 = arith.constant 16 : i32
    %16 = tpu.dynamic_rotate %4 by %c16_i32_10 dim 1 : vector<1x256xf32>, i32 -> vector<1x256xf32>
    %17 = arith.mulf %13, %16 : vector<1x256xf32>
    %18 = arith.addf %15, %17 : vector<1x256xf32>
    %19 = arith.addf %11, %18 : vector<1x256xf32>
    %c2 = arith.constant 2 : index
    %c0_11 = arith.constant 0 : index
    %20 = vector.load %arg2[%c2, %c0_11] : memref<24x256xf32, #tpu.memory_space<vmem>>, vector<1x256xf32>
    %c11 = arith.constant 11 : index
    %c0_12 = arith.constant 0 : index
    %21 = vector.load %arg2[%c11, %c0_12] : memref<24x256xf32, #tpu.memory_space<vmem>>, vector<1x256xf32>
    %c15_i32 = arith.constant 15 : i32
    %22 = tpu.dynamic_rotate %3 by %c15_i32 dim 1 : vector<1x256xf32>, i32 -> vector<1x256xf32>
    %23 = arith.mulf %20, %22 : vector<1x256xf32>
    %c15_i32_13 = arith.constant 15 : i32
    %24 = tpu.dynamic_rotate %4 by %c15_i32_13 dim 1 : vector<1x256xf32>, i32 -> vector<1x256xf32>
    %25 = arith.mulf %21, %24 : vector<1x256xf32>
    %26 = arith.addf %23, %25 : vector<1x256xf32>
    %27 = arith.addf %19, %26 : vector<1x256xf32>
    %c3 = arith.constant 3 : index
    %c0_14 = arith.constant 0 : index
    %28 = vector.load %arg2[%c3, %c0_14] : memref<24x256xf32, #tpu.memory_space<vmem>>, vector<1x256xf32>
    %c12 = arith.constant 12 : index
    %c0_15 = arith.constant 0 : index
    %29 = vector.load %arg2[%c12, %c0_15] : memref<24x256xf32, #tpu.memory_space<vmem>>, vector<1x256xf32>
    %c1_i32 = arith.constant 1 : i32
    %30 = tpu.dynamic_rotate %3 by %c1_i32 dim 1 : vector<1x256xf32>, i32 -> vector<1x256xf32>
    %31 = arith.mulf %28, %30 : vector<1x256xf32>
    %c1_i32_16 = arith.constant 1 : i32
    %32 = tpu.dynamic_rotate %4 by %c1_i32_16 dim 1 : vector<1x256xf32>, i32 -> vector<1x256xf32>
    %33 = arith.mulf %29, %32 : vector<1x256xf32>
    %34 = arith.addf %31, %33 : vector<1x256xf32>
    %35 = arith.addf %27, %34 : vector<1x256xf32>
    %c4 = arith.constant 4 : index
    %c0_17 = arith.constant 0 : index
    %36 = vector.load %arg2[%c4, %c0_17] : memref<24x256xf32, #tpu.memory_space<vmem>>, vector<1x256xf32>
    %c13 = arith.constant 13 : index
    %c0_18 = arith.constant 0 : index
    %37 = vector.load %arg2[%c13, %c0_18] : memref<24x256xf32, #tpu.memory_space<vmem>>, vector<1x256xf32>
    %38 = arith.mulf %36, %3 : vector<1x256xf32>
    %39 = arith.mulf %37, %4 : vector<1x256xf32>
    %40 = arith.addf %38, %39 : vector<1x256xf32>
    %41 = arith.addf %35, %40 : vector<1x256xf32>
    %c5 = arith.constant 5 : index
    %c0_19 = arith.constant 0 : index
    %42 = vector.load %arg2[%c5, %c0_19] : memref<24x256xf32, #tpu.memory_space<vmem>>, vector<1x256xf32>
    %c14 = arith.constant 14 : index
    %c0_20 = arith.constant 0 : index
    %43 = vector.load %arg2[%c14, %c0_20] : memref<24x256xf32, #tpu.memory_space<vmem>>, vector<1x256xf32>
    %c255_i32 = arith.constant 255 : i32
    %44 = tpu.dynamic_rotate %3 by %c255_i32 dim 1 : vector<1x256xf32>, i32 -> vector<1x256xf32>
    %45 = arith.mulf %42, %44 : vector<1x256xf32>
    %c255_i32_21 = arith.constant 255 : i32
    %46 = tpu.dynamic_rotate %4 by %c255_i32_21 dim 1 : vector<1x256xf32>, i32 -> vector<1x256xf32>
    %47 = arith.mulf %43, %46 : vector<1x256xf32>
    %48 = arith.addf %45, %47 : vector<1x256xf32>
    %49 = arith.addf %41, %48 : vector<1x256xf32>
    %c6 = arith.constant 6 : index
    %c0_22 = arith.constant 0 : index
    %50 = vector.load %arg2[%c6, %c0_22] : memref<24x256xf32, #tpu.memory_space<vmem>>, vector<1x256xf32>
    %c15 = arith.constant 15 : index
    %c0_23 = arith.constant 0 : index
    %51 = vector.load %arg2[%c15, %c0_23] : memref<24x256xf32, #tpu.memory_space<vmem>>, vector<1x256xf32>
    %c241_i32 = arith.constant 241 : i32
    %52 = tpu.dynamic_rotate %3 by %c241_i32 dim 1 : vector<1x256xf32>, i32 -> vector<1x256xf32>
    %53 = arith.mulf %50, %52 : vector<1x256xf32>
    %c241_i32_24 = arith.constant 241 : i32
    %54 = tpu.dynamic_rotate %4 by %c241_i32_24 dim 1 : vector<1x256xf32>, i32 -> vector<1x256xf32>
    %55 = arith.mulf %51, %54 : vector<1x256xf32>
    %56 = arith.addf %53, %55 : vector<1x256xf32>
    %57 = arith.addf %49, %56 : vector<1x256xf32>
    %c7 = arith.constant 7 : index
    %c0_25 = arith.constant 0 : index
    %58 = vector.load %arg2[%c7, %c0_25] : memref<24x256xf32, #tpu.memory_space<vmem>>, vector<1x256xf32>
    %c16 = arith.constant 16 : index
    %c0_26 = arith.constant 0 : index
    %59 = vector.load %arg2[%c16, %c0_26] : memref<24x256xf32, #tpu.memory_space<vmem>>, vector<1x256xf32>
    %c240_i32 = arith.constant 240 : i32
    %60 = tpu.dynamic_rotate %3 by %c240_i32 dim 1 : vector<1x256xf32>, i32 -> vector<1x256xf32>
    %61 = arith.mulf %58, %60 : vector<1x256xf32>
    %c240_i32_27 = arith.constant 240 : i32
    %62 = tpu.dynamic_rotate %4 by %c240_i32_27 dim 1 : vector<1x256xf32>, i32 -> vector<1x256xf32>
    %63 = arith.mulf %59, %62 : vector<1x256xf32>
    %64 = arith.addf %61, %63 : vector<1x256xf32>
    %65 = arith.addf %57, %64 : vector<1x256xf32>
    %c8 = arith.constant 8 : index
    %c0_28 = arith.constant 0 : index
    %66 = vector.load %arg2[%c8, %c0_28] : memref<24x256xf32, #tpu.memory_space<vmem>>, vector<1x256xf32>
    %c17 = arith.constant 17 : index
    %c0_29 = arith.constant 0 : index
    %67 = vector.load %arg2[%c17, %c0_29] : memref<24x256xf32, #tpu.memory_space<vmem>>, vector<1x256xf32>
    %c239_i32 = arith.constant 239 : i32
    %68 = tpu.dynamic_rotate %3 by %c239_i32 dim 1 : vector<1x256xf32>, i32 -> vector<1x256xf32>
    %69 = arith.mulf %66, %68 : vector<1x256xf32>
    %c239_i32_30 = arith.constant 239 : i32
    %70 = tpu.dynamic_rotate %4 by %c239_i32_30 dim 1 : vector<1x256xf32>, i32 -> vector<1x256xf32>
    %71 = arith.mulf %67, %70 : vector<1x256xf32>
    %72 = arith.addf %69, %71 : vector<1x256xf32>
    %73 = arith.addf %65, %72 : vector<1x256xf32>
    %c0_31 = arith.constant 0 : index
    %74 = memref.load %arg1[%c0_31] : memref<1xf32, #tpu.memory_space<smem>>
    %75 = vector.broadcast %74 : f32 to vector<1x256xf32>
    %76 = arith.addf %73, %75 : vector<1x256xf32>
    %77 = arith.negf %76 : vector<1x256xf32>
    %78 = math.exp %77 : vector<1x256xf32>
    %cst_32 = arith.constant 1.000000e+00 : f32
    %79 = vector.broadcast %cst_32 : f32 to vector<1x256xf32>
    %80 = arith.addf %79, %78 : vector<1x256xf32>
    %81 = arith.divf %79, %80 : vector<1x256xf32>
    %c0_33 = arith.constant 0 : index
    %c0_34 = arith.constant 0 : index
    %c0_35 = arith.constant 0 : index
    %82 = vector.load %arg3[%c0_33, %c0_34, %c0_35] : memref<1x4x256xf32, #tpu.memory_space<vmem>>, vector<1x4x256xf32>
    %83 = vector.shape_cast %81 : vector<1x256xf32> to vector<1x1x256xf32>
    %84 = vector.broadcast %83 : vector<1x1x256xf32> to vector<1x4x256xf32>
    %85 = arith.mulf %82, %84 : vector<1x4x256xf32>
    %c0_36 = arith.constant 0 : index
    %c0_37 = arith.constant 0 : index
    %c0_38 = arith.constant 0 : index
    %86 = vector.load %arg4[%c0_36, %c0_37, %c0_38] : memref<1x4x256xf32, #tpu.memory_space<vmem>>, vector<1x4x256xf32>
    tpu.vector_store %arg4[%c0_36, %c0_37, %c0_38], %85 {strides = array<i32>} : memref<1x4x256xf32, #tpu.memory_space<vmem>>, vector<1x4x256xf32>,
    return
  }
  func.func @transform_0(%arg0: i32) -> i32 {
    %c0_i32 = arith.constant 0 : i32
    %c0_i32_0 = arith.constant 0 : i32
    return %c0_i32 : i32
  }
  func.func @transform_1(%arg0: i32) -> (i32, i32) {
    %c0_i32 = arith.constant 0 : i32
    %c0_i32_0 = arith.constant 0 : i32
    %c0_i32_1 = arith.constant 0 : i32
    return %c0_i32, %c0_i32_0 : i32, i32
  }
  func.func @transform_2(%arg0: i32) -> (i32, i32, i32) {
    %c0_i32 = arith.constant 0 : i32
    %c0_i32_0 = arith.constant 0 : i32
    %c0_i32_1 = arith.constant 0 : i32
    return %arg0, %c0_i32, %c0_i32_0 : i32, i32, i32
  }
  func.func @transform_3(%arg0: i32) -> (i32, i32, i32) {
    %c0_i32 = arith.constant 0 : i32
    %c0_i32_0 = arith.constant 0 : i32
    %c0_i32_1 = arith.constant 0 : i32
    return %arg0, %c0_i32, %c0_i32_0 : i32, i32, i32
  }
}

</mosaic_0001>

<bundles_post_ra>
// kernel: tpu_custom_call.1
= control target key start
LH: loop header
LB: loop body
LE: loop exit
PB: predicated region body
PF: predicated region fallthrough
CT: control target
= control target key end

     0   :  { %s1196_s0 = inlined_call_operand.<no memory space> [shape: f32[1], index: 0, kind: input, shape index: {}]   ;;  %s1197_s1 = inlined_call_operand.hbm [shape: f32[24,256], index: 1, kind: input, shape index: {}]   ;;  %s1198_s2 = inlined_call_operand.hbm [shape: f32[2,4,256], index: 2, kind: input, shape index: {}]   ;;  %s1199_s3 = inlined_call_operand.hbm [shape: f32[2,4,256], index: 3, kind: output, shape index: {}]  }
   0x1   :  { %8 = sst [smem:[#allocation2]] %s1196_s0 }
   0x2   :  { %9 = vsyncpa [#allocation4], 0 }
   0x3   :  { %10 = vsyncpa [#allocation7], 0 }
   0x4   :  { %12 = vsyncpa [#allocation7 + $0x1], 0 }
   0x5   :  { %13 = vsyncpa [#allocation5], 0 }
   0x6   :  { %15 = vsyncpa [#allocation5 + $0x1], 0  ;;  %s902_s14 = smov 0   ;;  %s904_s15 = smov 0  }
   0x7   :  { %s906_s16 = smov 0   ;;  %s908_s17 = smov 0  }
   0x8 LB: > { %s134_s19 = sshll.u32 %s1197_s1, 4  ;;  %s926_s20 = sadd.s32 4294967295, %s866_s17   ;;  %s866_s17 = sphi %s908_s17, %s1209_s17   ;;  %s862_s16 = sphi %s906_s16, %s1208_s16   ;;  %s858_s15 = sphi %s904_s15, %s1207_s15   ;;  %s854_s14 = sphi %s902_s14, %s1206_s14   ;;  %s135_s19 = int_to_ptr.hbm [resolvable:$true] %s134_s19 }
   0x9   : > { %p647_p0 = scmp.ge.s32.totalorder %s866_s17, 1  ;;  %p84_p1 = scmp.eq.s32.totalorder %s926_s20, 0 }
   0xa   : > { %p120_p2 = scmp.lt.s32.totalorder %s866_s17, 3  ;;  %s868_s22 = smov [#allocation3]  }
   0xb   : > { %s136_s23 = sshll.u32 %s868_s22, 4  ;;  %s869_s24 = smov 256   ;;  %s137_s23 = int_to_ptr.vmem [resolvable:$true] %s136_s23 }
   0xc   : > { %p931_p3 = pnand %p647_p0, %p120_p2  ;;  %s870_s25 = smov 16  }
   0xd   : > { %s646_s26 = sadd.s32 4294967294, %s866_s17   ;;  %s942_s27 = sadd.s32 1, %s866_s17  }
   0xe   : > { %p673_p4 = pneg %p931_p3  ;;  %s70_s28 = sadd.s32 1, %s862_s16 }
   0xf   : > { %s67_s29 = ssub.s32 %s866_s17, %s942_s27  ;;  %p77_p7 = scmp.ne.s32.totalorder %s862_s16, %s858_s15 }
  0x10   : > { %p674_p6 = pnand %p673_p4, %p84_p1  ;;  %p68_p8 = scmp.eq.s32.totalorder %s67_s29, 0 }
  0x11   : > { %p78_p9 = scmp.eq.s32.totalorder %s866_s17, 0  ;;  %p83_p10 = scmp.ne.s32.totalorder %s858_s15, %s854_s14 }
  0x12   : > { %676 = dma.hbm_to_vmem [thread:$0]  (!%p674_p6), %s135_s19, 768, %s137_s23, [#allocation4], %s869_s24, %s869_s24, %s870_s25  }
  0x13   : > { %p107_p11 = scmp.eq.s32.totalorder %s926_s20, 1  ;;  %p958_p12 = por %p84_p1, %p83_p10 }
  0x14   : > { %s954_s30 = scalar_select %p68_p8, %s862_s16, %s70_s28  }
  0x15   : > { %p962_p13 = por %p107_p11, %p77_p7  ;;  %p113_p0 = scmp.eq.s32.totalorder %s646_s26, 1 }
  0x16   : > { %p79_p2 = por %p78_p9, %p77_p7  ;;  %s150_s6 = sand.u32 1, %s862_s16  }
  0x17   : > { %p967_p4 = por %p113_p0, %p83_p10  ;;  %p686_p6 = scmp.lt.s32.totalorder %s866_s17, 2 }
  0x18   : > { %s650_s8 = sshll.u32 %s150_s6, 3  ;;  %s663_s9 = sshll.u32 %s866_s17, 3 }
  0x19   : > { %s159_s12 = scalar_lea.hbm %s1198_s2, %s663_s9  ;;  %s154_s0 = scalar_lea.vmem [#allocation6], %s650_s8 }
  0x1a   : > { %s161_s13 = sshll.u32 %s159_s12, 4  ;;  %s163_s18 = sshll.u32 %s154_s0, 4  ;;  %s162_s13 = int_to_ptr.hbm [resolvable:$true] %s161_s13  ;;  %s164_s18 = int_to_ptr.vmem [resolvable:$true] %s163_s18 }
  0x1b   : > { %p976_p8 = pnand %p686_p6, %p79_p2  ;;  %s151_s22 = scalar_lea.sflag [#allocation7], %s150_s6 }
  0x1c   : > { %s766_s23 = sshra.s32 %s162_s13, 4  ;;  %s773_s28 = scalar_lea.hbm %s1198_s2, 16  ;;  %s767_s23 = int_to_ptr.hbm [resolvable:$true] %s766_s23 }
  0x1d   : > { %s768_s24 = scalar_lea.hbm %s767_s23, 8  ;;  %p770_p9 = pneg %p976_p8 }
  0x1e   : > { %p769_p7 = scmp.ne.s32.totalorder %s767_s23, %s768_s24  ;;  %p774_p0 = scmp.lt.s32.totalorder %s767_s23, %s1198_s2 }
  0x1f   : > { %p775_p2 = scmp.lt.s32.totalorder %s773_s28, %s768_s24 }
  0x20   : > { %p771_p10 = pnand %p770_p9, %p769_p7 }
  0x21   : > { %p776_p6 = por %p775_p2, %p774_p0 }
  0x22   : > { %p772_p11 = pneg %p771_p10 }
  0x24   : > { %p777_p5 = pnand %p776_p6, %p772_p11 }
  0x26   : > { %780 = shalt.err (!%p777_p5)
}
  0x27   : > { %680 = dma.hbm_to_vmem [thread:$0]  (!%p976_p8), %s162_s13, 128, %s164_s18, %s151_s22  }
  0x28   : > { %172 = sbr.rel (%p931_p3) target bundleno = 319 (0x13f), region = 32 }
  0x2d   : > { %841 = dma.done.wait (%p84_p1), [#allocation4], 768  }
  0x2e   : > { %843 = vsyncadd (%p84_p1), [#allocation4], 4294966528  ;;  %s997_s6 = sand.u32 1, %s858_s15  }
  0x2f   : > { %s655_s9 = sshll.u32 %s997_s6, 3  ;;  %s180_s10 = scalar_lea.sflag [#allocation7], %s997_s6 }
  0x30   : > { %s183_s11 = scalar_lea.vmem [#allocation6], %s655_s9 }
  0x31   : > { %845 = dma.done.wait (%p958_p12), %s180_s10, 128  }
  0x32   : > { %847 = vsyncadd (%p958_p12), %s180_s10, 4294967168  ;;  %v1007_v0 = vld [vmem:[%s183_s11] sm:$0xff]  ;;  %vm214_vm0 = vcmask 1043456   ;;  %s871_s21 = smov 1   ;;  %s872_s4 = smov 17   ;;  %v257_v43 = vlaneseq  ;;  %vm265_vm4 = vcmask 1040384  }
  0x33   : > { %209 = vst [vmem:[#allocation1] ss:$2 sm:$0xff] %v1007_v0  ;;  %s873_s12 = smov 16   ;;  %s874_s13 = smov 15  }
  0x34   : > { %s875_s0 = smov 127   ;;  %s876_s18 = smov 113   ;;  %v1057_v46 = vand.u32 127, %v257_v43  ;;  %v283_v60 = vld [vmem:[#allocation3 + $0x1] ss:$8 sm:$0x3] }
  0x35   : > { %s877_s19 = smov 112   ;;  %s878_s22 = smov 111   ;;  %v252_v61 = vld [vmem:[#allocation3 + $0x11] ss:$8 sm:$0x3] }
  0x36   : > { %vm290_vm1 = vcmp.lt.s32.totalorder %v1057_v46, 16  ;;  %vm259_vm2 = vcmp.lt.s32.totalorder %v1057_v46, 17  ;;  %vm321_vm3 = vcmp.lt.s32.totalorder %v1057_v46, 15  ;;  %vm352_vm5 = vcmp.lt.s32.totalorder %v1057_v46, 1  ;;  %s517_s23 = sld [smem:[#allocation2]]  ;;  %s664_s24 = sshll.u32 %s926_s20, 3 }
  0x37   : > { %vm401_vm6 = vcmp.lt.s32.totalorder %v1057_v46, 127  ;;  %vm432_vm7 = vcmp.lt.s32.totalorder %v1057_v46, 113  ;;  %vm463_vm8 = vcmp.lt.s32.totalorder %v1057_v46, 112  ;;  %vm494_vm9 = vcmp.lt.s32.totalorder %v1057_v46, 111  ;;  %s559_s28 = scalar_lea.hbm %s1199_s3, %s664_s24  ;;  %s206_s29 = scalar_lea.vmem [#allocation8], %s655_s9 }
  0x38   : > { %s561_s8 = sshll.u32 %s206_s29, 4  ;;  %s563_s10 = sshll.u32 %s559_s28, 4  ;;  %s562_s8 = int_to_ptr.vmem [resolvable:$true] %s561_s8  ;;  %s564_s10 = int_to_ptr.hbm [resolvable:$true] %s563_s10 }
  0x39   : > { %s548_s20 = scalar_lea.sflag [#allocation5], %s997_s6  ;;  %s810_s11 = sshra.s32 %s564_s10, 4  ;;  %s811_s11 = int_to_ptr.hbm [resolvable:$true] %s810_s11 }
  0x3a   : > { %v211_v1 = vld.sshfl [vmem:[#allocation1 + $0x8] sm:$0xff pattern:$0x75316420]  ;;  %v210_v2 = vld.sshfl [vmem:[#allocation1] sm:$0xff pattern:$0x75316420]  ;;  %p817_p12 = scmp.lt.s32.totalorder %s811_s11, %s1199_s3 }
  0x3b   : > { %v222_v3 = vsel %vm214_vm0, %v211_v1, 0.0  ;;  %v215_v4 = vsel %vm214_vm0, %v210_v2, 0.0  ;;  %231 = vst [vmem:[#allocation1] ss:$2 sm:$0xff] %v1007_v0  ;;  %s816_s9 = scalar_lea.hbm %s1199_s3, 16 }
  0x3c   : > { %v223_v5 = vrot.slane %v222_v3, 4  ;;  %v216_v6 = vrot.slane %v215_v4, 4 }
  0x3e   : > { %v224_v7 = vadd.f32 %v223_v5, %v222_v3  ;;  %v217_v8 = vadd.f32 %v216_v6, %v215_v4  ;;  %v285_v6 = vld [vmem:[#allocation3 + $0x12] ss:$8 sm:$0x3] }
  0x40   : > { %v225_v9 = vrot.slane %v224_v7, 2  ;;  %v218_v10 = vrot.slane %v217_v8, 2 }
  0x42   : > { %v226_v11 = vadd.f32 %v225_v9, %v224_v7  ;;  %v219_v12 = vadd.f32 %v218_v10, %v217_v8  ;;  %v232_v13 = vld.sshfl [vmem:[#allocation1] sm:$0xff pattern:$0x75316420]  ;;  %v233_v14 = vld.sshfl [vmem:[#allocation1 + $0x8] sm:$0xff pattern:$0x75316420] }
  0x43   : > { %v236_v15 = vsel %vm214_vm0, %v232_v13, -inf  ;;  %v243_v16 = vsel %vm214_vm0, %v233_v14, -inf }
  0x44   : > { %v227_v17 = vrot.slane %v226_v11, 1  ;;  %v220_v18 = vrot.slane %v219_v12, 1  ;;  %v237_v19 = vrot.slane %v236_v15, 4  ;;  %v244_v20 = vrot.slane %v243_v16, 4 }
  0x46   : > { %v228_v21 = vadd.f32 %v227_v17, %v226_v11  ;;  %v221_v22 = vadd.f32 %v220_v18, %v219_v12  ;;  %v238_v23 = vmax.f32 %v236_v15, %v237_v19  ;;  %v245_v24 = vmax.f32 %v243_v16, %v244_v20  ;;  %v250_v11 = vld [vmem:[#allocation3] ss:$8 sm:$0x3]  ;;  %v316_v20 = vld [vmem:[#allocation3 + $0x13] ss:$8 sm:$0x3] }
  0x48   : > { %v1015_v25 = vmul.f32 0.25, %v228_v21  ;;  %v1017_v26 = vmul.f32 0.25, %v221_v22  ;;  %v239_v27 = vrot.slane %v238_v23, 2  ;;  %v246_v29 = vrot.slane %v245_v24, 2 }
  0x4a   : > { %350 = vrot.lane.b32.xlu1 %v1015_v25, %s871_s21  ;;  %253 = vrot.lane.b32.xlu0 %v1017_v26, %s872_s4  ;;  %v240_v28 = vmax.f32 %v238_v23, %v239_v27  ;;  %v247_v32 = vmax.f32 %v245_v24, %v246_v29  ;;  %v314_v27 = vld [vmem:[#allocation3 + $0x2] ss:$8 sm:$0x3] }
  0x4b   : > { %286 = vrot.lane.b32.xlu2 %v1017_v26, %s873_s12 }
  0x4c   : > { %v241_v30 = vrot.slane %v240_v28, 1  ;;  %v248_v33 = vrot.slane %v247_v32, 1 }
  0x4e   : > { %v1022_v31 = vmax.f32 %v240_v28, %v241_v30  ;;  %v1027_v34 = vmax.f32 %v247_v32, %v248_v33  ;;  %v345_v33 = vld [vmem:[#allocation3 + $0x3] ss:$8 sm:$0x3] }
  0x52   : > { %269 = vrot.lane.b32.xlu1 %v1022_v31, %s872_s4  ;;  %255 = vrot.lane.b32.xlu0 %v1015_v25, %s872_s4 }
  0x53   : > { %288 = vrot.lane.b32.xlu2 %v1015_v25, %s873_s12 }
  0x5a   : > { %271 = vrot.lane.b32.xlu1 %v1027_v34, %s872_s4  ;;  %319 = vrot.lane.b32.xlu0 %v1015_v25, %s874_s13 }
  0x5b   : > { %317 = vrot.lane.b32.xlu2 %v1017_v26, %s874_s13 }
  0x62   : > { %301 = vrot.lane.b32.xlu1 %v1027_v34, %s873_s12  ;;  %348 = vrot.lane.b32.xlu0 %v1017_v26, %s871_s21 }
  0x63   : > { %332 = vrot.lane.b32.xlu2 %v1027_v34, %s874_s13 }
  0x6a   : > { %330 = vrot.lane.b32.xlu1 %v1022_v31, %s874_s13  ;;  %299 = vrot.lane.b32.xlu0 %v1022_v31, %s873_s12 }
  0x6b   : > { %361 = vrot.lane.b32.xlu2 %v1022_v31, %s871_s21 }
  0x72   : > { %397 = vrot.lane.b32.xlu1 %v1017_v26, %s875_s0  ;;  %363 = vrot.lane.b32.xlu0 %v1027_v34, %s871_s21  ;;  %s812_s21 = scalar_lea.hbm %s811_s11, 8 }
  0x73   : > { %399 = vrot.lane.b32.xlu2 %v1015_v25, %s875_s0  ;;  %p813_p1 = scmp.ne.s32.totalorder %s811_s11, %s812_s21  ;;  %p818_p8 = scmp.lt.s32.totalorder %s816_s9, %s812_s21 }
  0x75   : > { %p814_p3 = pnand %p813_p1, %p962_p13  ;;  %p819_p7 = por %p818_p8, %p817_p12 }
  0x77   : > { %p815_p5 = pneg %p814_p3 }
  0x79   : > { %p820_p9 = pnand %p819_p7, %p815_p5 }
  0x7a   : > { %412 = vrot.lane.b32.xlu1 %v1027_v34, %s875_s0  ;;  %410 = vrot.lane.b32.xlu0 %v1022_v31, %s875_s0 }
  0x7b   : > { %428 = vrot.lane.b32.xlu2 %v1017_v26, %s876_s18 }
  0x82   : > { %441 = vrot.lane.b32.xlu1 %v1022_v31, %s876_s18  ;;  %430 = vrot.lane.b32.xlu0 %v1015_v25, %s876_s18 }
  0x83   : > { %443 = vrot.lane.b32.xlu2 %v1027_v34, %s876_s18 }
  0x8a   : > { %461 = vrot.lane.b32.xlu1 %v1015_v25, %s877_s19  ;;  %459 = vrot.lane.b32.xlu0 %v1017_v26, %s877_s19 }
  0x8b   : > { %472 = vrot.lane.b32.xlu2 %v1022_v31, %s877_s19 }
  0x92   : > { %490 = vrot.lane.b32.xlu1 %v1017_v26, %s878_s22  ;;  %474 = vrot.lane.b32.xlu0 %v1027_v34, %s877_s19 }
  0x93   : > { %492 = vrot.lane.b32.xlu2 %v1015_v25, %s878_s22 }
  0x9a   : > { %505 = vrot.lane.b32.xlu1 %v1027_v34, %s878_s22  ;;  %503 = vrot.lane.b32.xlu0 %v1022_v31, %s878_s22 }
  0xa5   : > { %v287_v35 = vpop.permute.xlu2 %286 }
  0xad   : > { %v289_v36 = vpop.permute.xlu2 %288 }
  0xae   : > { %v291_v50 = vsel %vm290_vm1, %v287_v35, %v289_v36  ;;  %v292_v55 = vsel %vm290_vm1, %v289_v36, %v287_v35 }
  0xaf   : > { %v295_v53 = vrot.slane %v291_v50, 7 }
  0xb1   : > { %v296_v3 = vsel %vm265_vm4, %v292_v55, %v295_v53 }
  0xb2   : > { %v298_v15 = vmul.f32 %v296_v3, %v283_v60 }
  0xb5   : > { %v318_v39 = vpop.permute.xlu2 %317 }
  0xbc   : > { %v1055_v37 = vpop.permute.xlu1 %350  ;;  %v254_v38 = vpop.permute.xlu0 %253 }
  0xbd   : > { %v333_v42 = vpop.permute.xlu2 %332 }
  0xc4   : > { %v270_v40 = vpop.permute.xlu1 %269  ;;  %v256_v41 = vpop.permute.xlu0 %255 }
  0xc5   : > { %v362_v47 = vpop.permute.xlu2 %361  ;;  %v260_v52 = vsel %vm259_vm2, %v254_v38, %v256_v41  ;;  %v261_v8 = vsel %vm259_vm2, %v256_v41, %v254_v38 }
  0xc6   : > { %v264_v57 = vrot.slane %v260_v52, 7 }
  0xc8   : > { %v266_v12 = vsel %vm265_vm4, %v261_v8, %v264_v57 }
  0xc9   : > { %v268_v22 = vmul.f32 %v266_v12, %v250_v11 }
  0xcc   : > { %v272_v44 = vpop.permute.xlu1 %271  ;;  %v320_v45 = vpop.permute.xlu0 %319 }
  0xcd   : > { %v273_v51 = vsel %vm259_vm2, %v270_v40, %v272_v44  ;;  %v1070_v56 = vpop.permute.xlu2 %399  ;;  %v274_v62 = vsel %vm259_vm2, %v272_v44, %v270_v40  ;;  %v322_v63 = vsel %vm321_vm3, %v318_v39, %v320_v45  ;;  %v323_v23 = vsel %vm321_vm3, %v320_v45, %v318_v39  ;;  %v347_v39 = vld [vmem:[#allocation3 + $0x14] ss:$8 sm:$0x3] }
  0xce   : > { %v277_v54 = vrot.slane %v273_v51, 7  ;;  %v326_v13 = vrot.slane %v322_v63, 7  ;;  %v381_v63 = vrot.slane %v1015_v25, 7 }
  0xd0   : > { %v278_v4 = vsel %vm265_vm4, %v274_v62, %v277_v54  ;;  %v327_v28 = vsel %vm265_vm4, %v323_v23, %v326_v13  ;;  %v382_v8 = vsel %vm265_vm4, %v1017_v26, %v381_v63 }
  0xd1   : > { %v280_v16 = vmul.f32 %v278_v4, %v252_v61  ;;  %v329_v43 = vmul.f32 %v327_v28, %v314_v27  ;;  %v387_v61 = vrot.slane %v1027_v34, 7  ;;  %v378_v34 = vld [vmem:[#allocation3 + $0x15] ss:$8 sm:$0x3] }
  0xd2   : > { %v425_v27 = vld [vmem:[#allocation3 + $0x6] ss:$8 sm:$0x3] }
  0xd3   : > { %v281_v32 = vadd.f32 %v280_v16, %v268_v22 }
  0xd4   : > { %v302_v48 = vpop.permute.xlu1 %301  ;;  %v349_v49 = vpop.permute.xlu0 %348 }
  0xd5   : > { %v353_v9 = vsel %vm352_vm5, %v349_v49, %v1055_v37  ;;  %v354_v35 = vsel %vm352_vm5, %v1055_v37, %v349_v49  ;;  %v429_v40 = vpop.permute.xlu2 %428 }
  0xd6   : > { %v357_v19 = vrot.slane %v353_v9, 7 }
  0xd8   : > { %v358_v41 = vsel %vm265_vm4, %v354_v35, %v357_v19  ;;  %v394_v19 = vld [vmem:[#allocation3 + $0x5] ss:$8 sm:$0x3] }
  0xd9   : > { %v360_v50 = vmul.f32 %v358_v41, %v345_v33 }
  0xdc   : > { %v331_v58 = vpop.permute.xlu1 %330  ;;  %v300_v59 = vpop.permute.xlu0 %299 }
  0xdd   : > { %v334_v1 = vsel %vm321_vm3, %v331_v58, %v333_v42  ;;  %v303_v2 = vsel %vm290_vm1, %v300_v59, %v302_v48  ;;  %v304_v10 = vsel %vm290_vm1, %v302_v48, %v300_v59  ;;  %v335_v17 = vsel %vm321_vm3, %v333_v42, %v331_v58  ;;  %v444_v57 = vpop.permute.xlu2 %443 }
  0xde   : > { %v338_v5 = vrot.slane %v334_v1, 7  ;;  %v307_v7 = vrot.slane %v303_v2, 7 }
  0xe0   : > { %v308_v14 = vsel %vm265_vm4, %v304_v10, %v307_v7  ;;  %v339_v21 = vsel %vm265_vm4, %v335_v17, %v338_v5  ;;  %v388_v5 = vsel %vm265_vm4, %v1022_v31, %v387_v61  ;;  %v376_v7 = vld [vmem:[#allocation3 + $0x4] ss:$8 sm:$0x3]  ;;  %v489_v61 = vld [vmem:[#allocation3 + $0x21] ss:$8 sm:$0x3] }
  0xe1   : > { %v310_v18 = vmul.f32 %v308_v14, %v285_v6  ;;  %v341_v36 = vmul.f32 %v339_v21, %v316_v20  ;;  %v390_v11 = vmul.f32 %v388_v5, %v378_v34  ;;  %v384_v16 = vmul.f32 %v382_v8, %v376_v7  ;;  %v427_v21 = vld [vmem:[#allocation3 + $0x17] ss:$8 sm:$0x3] }
  0xe3   : > { %v311_v24 = vadd.f32 %v310_v18, %v298_v15  ;;  %v342_v51 = vadd.f32 %v341_v36, %v329_v43  ;;  %v396_v15 = vld [vmem:[#allocation3 + $0x16] ss:$8 sm:$0x3]  ;;  %v391_v36 = vadd.f32 %v390_v11, %v384_v16 }
  0xe4   : > { %v398_v29 = vpop.permute.xlu1 %397  ;;  %v364_v30 = vpop.permute.xlu0 %363 }
  0xe5   : > { %v365_v38 = vsel %vm352_vm5, %v362_v47, %v364_v30  ;;  %v312_v44 = vadd.f32 %v311_v24, %v281_v32  ;;  %v366_v45 = vsel %vm352_vm5, %v364_v30, %v362_v47  ;;  %v473_v60 = vpop.permute.xlu2 %472  ;;  %v403_v2 = vsel %vm401_vm6, %v1070_v56, %v398_v29 }
  0xe6   : > { %v369_v42 = vrot.slane %v365_v38, 7  ;;  %v406_v25 = vrot.slane %v403_v2, 7  ;;  %v402_v31 = vsel %vm401_vm6, %v398_v29, %v1070_v56  ;;  %v458_v38 = vld [vmem:[#allocation3 + $0x20] ss:$8 sm:$0x3] }
  0xe7   : > { %v343_v37 = vadd.f32 %v342_v51, %v312_v44  ;;  %v456_v44 = vld [vmem:[#allocation3 + $0x7] ss:$8 sm:$0x3] }
  0xe8   : > { %v370_v48 = vsel %vm265_vm4, %v366_v45, %v369_v42  ;;  %v407_v20 = vsel %vm265_vm4, %v402_v31, %v406_v25 }
  0xe9   : > { %v372_v52 = vmul.f32 %v370_v48, %v347_v39  ;;  %v409_v41 = vmul.f32 %v407_v20, %v394_v19 }
  0xeb   : > { %v373_v49 = vadd.f32 %v372_v52, %v360_v50 }
  0xec   : > { %v413_v53 = vpop.permute.xlu1 %412  ;;  %v411_v54 = vpop.permute.xlu0 %410 }
  0xed   : > { %v374_v55 = vadd.f32 %v373_v49, %v343_v37  ;;  %v415_v1 = vsel %vm401_vm6, %v413_v53, %v411_v54  ;;  %v414_v12 = vsel %vm401_vm6, %v411_v54, %v413_v53  ;;  %v493_v14 = vpop.permute.xlu2 %492 }
  0xee   : > { %v418_v6 = vrot.slane %v415_v1, 7 }
  0xef   : > { %v392_v52 = vadd.f32 %v391_v36, %v374_v55 }
  0xf0   : > { %v419_v17 = vsel %vm265_vm4, %v414_v12, %v418_v6  ;;  %v518_v6 = vstv %s517_s23 }
  0xf1   : > { %v421_v32 = vmul.f32 %v419_v17, %v396_v15 }
  0xf3   : > { %v422_v50 = vadd.f32 %v421_v32, %v409_v41 }
  0xf4   : > { %v442_v58 = vpop.permute.xlu1 %441  ;;  %v431_v59 = vpop.permute.xlu0 %430 }
  0xf5   : > { %v446_v3 = vsel %vm432_vm7, %v444_v57, %v442_v58  ;;  %v434_v4 = vsel %vm432_vm7, %v431_v59, %v429_v40  ;;  %v445_v22 = vsel %vm432_vm7, %v442_v58, %v444_v57  ;;  %v433_v23 = vsel %vm432_vm7, %v429_v40, %v431_v59  ;;  %v487_v57 = vld [vmem:[#allocation3 + $0x10] ss:$8 sm:$0x3] }
  0xf6   : > { %v449_v9 = vrot.slane %v446_v3, 7  ;;  %v437_v10 = vrot.slane %v434_v4, 7 }
  0xf8   : > { %v450_v24 = vsel %vm265_vm4, %v445_v22, %v449_v9  ;;  %v438_v28 = vsel %vm265_vm4, %v433_v23, %v437_v10 }
  0xf9   : > { %v452_v39 = vmul.f32 %v450_v24, %v427_v21  ;;  %v440_v42 = vmul.f32 %v438_v28, %v425_v27 }
  0xfb   : > { %v453_v53 = vadd.f32 %v452_v39, %v440_v42 }
  0xfc   : > { %v462_v47 = vpop.permute.xlu1 %461  ;;  %v460_v62 = vpop.permute.xlu0 %459 }
  0xfd   : > { %v465_v13 = vsel %vm463_vm8, %v462_v47, %v460_v62  ;;  %v464_v43 = vsel %vm463_vm8, %v460_v62, %v462_v47  ;;  %v423_v62 = vadd.f32 %v422_v50, %v392_v52 }
  0xfe   : > { %v468_v29 = vrot.slane %v465_v13, 7 }
  0xff   : > { %v454_v2 = vadd.f32 %v453_v53, %v423_v62 }
 0x100   : > { %v469_v45 = vsel %vm265_vm4, %v464_v43, %v468_v29 }
 0x101   : > { %v471_v54 = vmul.f32 %v469_v45, %v456_v44 }
 0x104   : > { %v491_v18 = vpop.permute.xlu1 %490  ;;  %v475_v26 = vpop.permute.xlu0 %474 }
 0x105   : > { %v477_v56 = vsel %vm463_vm8, %v475_v26, %v473_v60  ;;  %v496_v33 = vsel %vm494_vm9, %v493_v14, %v491_v18  ;;  %v476_v35 = vsel %vm463_vm8, %v473_v60, %v475_v26  ;;  %v495_v58 = vsel %vm494_vm9, %v491_v18, %v493_v14 }
 0x106   : > { %v480_v30 = vrot.slane %v477_v56, 7  ;;  %v499_v48 = vrot.slane %v496_v33, 7 }
 0x108   : > { %v481_v40 = vsel %vm265_vm4, %v476_v35, %v480_v30  ;;  %v500_v60 = vsel %vm265_vm4, %v495_v58, %v499_v48 }
 0x109   : > { %v483_v51 = vmul.f32 %v481_v40, %v458_v38  ;;  %v502_v3 = vmul.f32 %v500_v60, %v487_v57 }
 0x10b   : > { %v484_v63 = vadd.f32 %v483_v51, %v471_v54 }
 0x10c   : > { %v506_v37 = vpop.permute.xlu1 %505  ;;  %v504_v49 = vpop.permute.xlu0 %503 }
 0x10d   : > { %v508_v59 = vsel %vm494_vm9, %v506_v37, %v504_v49  ;;  %v507_v55 = vsel %vm494_vm9, %v504_v49, %v506_v37  ;;  %v485_v34 = vadd.f32 %v484_v63, %v454_v2 }
 0x10e   : > { %v511_v47 = vrot.slane %v508_v59, 7 }
 0x110   : > { %v512_v1 = vsel %vm265_vm4, %v507_v55, %v511_v47 }
 0x111   : > { %v514_v4 = vmul.f32 %v512_v1, %v489_v61 }
 0x113   : > { %v515_v5 = vadd.f32 %v514_v4, %v502_v3 }
 0x115   : > { %v516_v25 = vadd.f32 %v515_v5, %v485_v34 }
 0x117   : > { %v519_v7 = vadd.f32 %v518_v6, %v516_v25 }
 0x119   : > { %v657_v8 = vmul.f32 -1.442695, %v519_v7 }
 0x11b   : > { %732 = vpow2.f32 %v657_v8 }
 0x121   : > { %v733_v9 = vpop.eup %732 }
 0x122   : > { %v523_v10 = vadd.f32 1.0, %v733_v9 }
 0x124   : > { %734 = vrcp.f32 %v523_v10  ;;  %v535_v13 = vand.u32 2147483648, %v523_v10  ;;  %v533_v31 = vand.u32 2147483647, %v523_v10  ;;  %vm529_vm11 = vweird.f32 %v523_v10 }
 0x126   : > { %v536_v16 = vor.u32 1.1754944e-38, %v535_v13  ;;  %vm534_vm13 = vcmp.eq.f32.partialorder %v533_v31, 8.507059e+37 }
 0x12a   : > { %v735_v11 = vpop.eup %734 }
 0x12b   : > { %v525_v12 = vmul.f32 %v735_v11, %v523_v10  ;;  %vm530_vm10 = vweird.f32 %v735_v11 }
 0x12c   : > { %vm531_vm12 = vmor %vm529_vm11, %vm530_vm10 }
 0x12d   : > { %v526_v46 = vsub.f32 1.0, %v525_v12 }
 0x12f   : > { %v527_v14 = vmul.f32 %v735_v11, %v526_v46 }
 0x131   : > { %v528_v15 = vadd.f32 %v735_v11, %v527_v14 }
 0x133   : > { %v532_v17 = vsel %vm531_vm12, %v735_v11, %v528_v15 }
 0x134   : > { %v537_v18 = vsel %vm534_vm13, %v536_v16, %v532_v17 }
 0x135   : > { %v541_v26 = vperm.slane %v537_v18, 1  ;;  %v540_v19 = vperm.slane %v537_v18, 0 }
 0x137   : > { %v542_v20 = vrot.slane %v541_v26, 4 }
 0x139   : > { %v543_v21 = vsel %vm214_vm0, %v540_v19, %v542_v20 }
 0x13a   : > { %v545_v22 = vmul.f32 %v543_v21, %v1007_v0 }
 0x13c   : > { %546 = vst [vmem:[%s206_s29] sm:$0xff] %v545_v22 }
 0x13d   : > { %823 = shalt.err (!%p820_p9)
}
 0x13e   : > { %671 = dma.vmem_to_hbm [thread:$0]  (%p962_p13), %s562_s8, 128, %s564_s10, %s548_s20  }
 0x13f PF: > { %s575_s6 = sand.u32 1, %s854_s14   ;;  %p1205_p10 = scmp.ge.s32.totalorder %s866_s17, 2 }
 0x140   : > { %s576_s18 = scalar_lea.sflag [#allocation5], %s575_s6 }
 0x141   : > { %p682_p11 = pnand %p1205_p10, %p967_p4 }
 0x143   : > { %p683_p0 = pneg %p682_p11 }
 0x145   : > { %849 = dma.done.wait (%p683_p0), %s576_s18, 128  }
 0x146   : > { %851 = vsyncadd (%p683_p0), %s576_s18, 4294967168  ;;  %p18_p2 = scmp.ge.s32.totalorder %s942_s27, 4   ;;  %s1206_s14 = smov %s858_s15 }
 0x147   : > { %s1207_s15 = smov %s862_s16  ;;  %s1208_s16 = smov %s954_s30 }
 0x148   : > { %s1209_s17 = smov %s942_s27  ;;  %20 = sbr.rel (!%p18_p2) target bundleno = 8 (0x8), region = 99 }
 0x14d   :  { %582 = vsyncpa [#allocation4], 1 }
 0x14e   :  { %584 = vsyncpa [#allocation4 + $0x1], 1 }
 0x14f   :  { %585 = vsyncpa [#allocation7], 1 }
 0x150   :  { %587 = vsyncpa [#allocation7 + $0x1], 1 }
 0x151   :  { %588 = vsyncpa [#allocation5], 1 }
 0x152   :  { %590 = vsyncpa [#allocation5 + $0x1], 1 }

</bundles_post_ra>
